<compile_context>
chip_gen: v6e
topology: v6e:2x2x1
jax: 0.10.0
libtpu: 0.0.40
codegen_flags: <defaults>
</compile_context>

<pallas_src>
import jax
import jax.numpy as jnp
from jax.experimental import pallas as pl
from jax.experimental.pallas import tpu as pltpu


def make_attention_kernel(batch_block, seq, dim, heads, dim_head):
    inner = heads * dim_head

    def kernel(x_ref, bias_ref, wqkv_ref, wo_ref, bo_ref, o_ref):
        # x: (Bt, N, DIM) bf16 -> flatten to (Bt*N, DIM) rows for one MXU-friendly matmul
        x = x_ref[...].reshape(batch_block * seq, dim)

        # to_qkv (no bias); scale already folded into the q columns of wqkv.
        qkv = jnp.dot(x, wqkv_ref[...], preferred_element_type=jnp.float32)
        qkv = qkv.astype(jnp.bfloat16)          # bf16 operands for the attention matmuls

        out_rows = []
        for b in range(batch_block):            # static loops: Bt, heads are compile-time
            rows = slice(b * seq, (b + 1) * seq)
            bias_b = bias_ref[b]                 # (N, N) f32: dist-MLP + mask, precomputed
            head_outs = []
            for h in range(heads):
                lo = h * dim_head
                q = qkv[rows, lo:lo + dim_head]
                k = qkv[rows, inner + lo:inner + lo + dim_head]
                v = qkv[rows, 2 * inner + lo:2 * inner + lo + dim_head]

                # q @ k^T without an explicit transpose (contract last dims on the MXU)
                dots = jax.lax.dot_general(
                    q, k, (((1,), (1,)), ((), ())),
                    preferred_element_type=jnp.float32)          # (N, N) f32
                dots = dots + bias_b

                # numerically-stable softmax, kept in f32; divide -> EUP reciprocal
                dots = dots - jnp.max(dots, axis=-1, keepdims=True)
                e = jnp.exp(dots)
                inv = pl.reciprocal(jnp.sum(e, axis=-1, keepdims=True), approx=True)
                attn = (e * inv).astype(jnp.bfloat16)
                # dropout(p=0.0) -> identity.  TODO(synk): stochastic dropout not implemented.

                head_outs.append(
                    jnp.dot(attn, v, preferred_element_type=jnp.float32))  # (N, Dh)
            out_rows.append(jnp.concatenate(head_outs, axis=-1))            # (N, inner)

        out = jnp.concatenate(out_rows, axis=0).astype(jnp.bfloat16)        # (Bt*N, inner)

        # to_out: Linear(inner, dim) + bias (bias added in f32)
        out = jnp.dot(out, wo_ref[...], preferred_element_type=jnp.float32) + bo_ref[...]
        o_ref[...] = out.reshape(batch_block, seq, dim).astype(o_ref.dtype)

    return kernel


def attention_forward(x, distance, attn_mask, params, heads, dim_head, batch_block=None):
    B, N, DIM = x.shape
    inner = heads * dim_head
    scale = dim_head ** (-0.5)

    if batch_block is None:
        batch_block = min(B, 8)
    assert B % batch_block == 0, "batch_block must divide B"

    # ---- wrapper-side (plain XLA) precompute: fused distance-MLP + mask bias (B,N,N) ----
    h1 = jnp.maximum(
        jnp.einsum('bnmk,kd->bnmd', distance, params['w1']) + params['b1'][0], 0.0)
    dist_bias = (h1 @ params['w2'])[..., 0] + params['b2'][0, 0]          # (B, N, N)
    mask_bias = jnp.where(attn_mask != 0, 0.0, -1000.0)
    bias = (dist_bias + mask_bias).astype(jnp.float32)

    # ---- fold attention scale into the q columns of wqkv; cast MXU operands to bf16 ----
    col_scale = jnp.concatenate(
        [jnp.full((inner,), scale, jnp.float32), jnp.ones((2 * inner,), jnp.float32)])
    wqkv = (params['wqkv'] * col_scale[None, :]).astype(jnp.bfloat16)
    wo = params['wo'].astype(jnp.bfloat16)
    bo = params['bo'].astype(jnp.float32)
    x_bf16 = x.astype(jnp.bfloat16)

    kernel = make_attention_kernel(batch_block, N, DIM, heads, dim_head)
    grid = (B // batch_block,)

    in_specs = [
        pl.BlockSpec((batch_block, N, DIM), lambda i: (i, 0, 0)),   # x (bf16)
        pl.BlockSpec((batch_block, N, N), lambda i: (i, 0, 0)),     # fused bias (f32)
        pl.BlockSpec((DIM, 3 * inner), lambda i: (0, 0)),           # wqkv (bf16, scaled)
        pl.BlockSpec((inner, DIM), lambda i: (0, 0)),               # to_out W (bf16)
        pl.BlockSpec((1, DIM), lambda i: (0, 0)),                   # to_out b (f32)
    ]
    out_spec = pl.BlockSpec((batch_block, N, DIM), lambda i: (i, 0, 0))

    return pl.pallas_call(
        kernel,
        out_shape=jax.ShapeDtypeStruct((B, N, DIM), jnp.float32),
        grid_spec=pltpu.PrefetchScalarGridSpec(
            num_scalar_prefetch=0,
            grid=grid,
            in_specs=in_specs,
            out_specs=out_spec,
        ),
        compiler_params=pltpu.CompilerParams(
            dimension_semantics=("parallel",),
            vmem_limit_bytes=48 * 1024 * 1024),   # explicit budget (fits v7x 64 MiB)
    )(x_bf16, bias, wqkv, wo, bo)


def reference_forward(x, distance, attn_mask, params, heads, dim_head):
    """Pure-JAX f32 reference matching the PyTorch forward (dropout=0)."""
    B, N, DIM = x.shape
    inner = heads * dim_head
    scale = dim_head ** (-0.5)
    qkv = x @ params['wqkv']
    q, k, v = jnp.split(qkv, 3, axis=-1)

    def sh(t):
        return jnp.transpose(t.reshape(B, N, heads, dim_head), (0, 2, 1, 3))

    q, k, v = sh(q), sh(k), sh(v)
    dots = jnp.einsum('bhnd,bhmd->bhnm', q, k) * scale
    h1 = jnp.maximum(distance @ params['w1'] + params['b1'][0], 0.0)
    dist = (h1 @ params['w2'] + params['b2'][0])[..., 0][:, None]     # (B,1,N,N)
    dots = dots + dist
    mask_bias = jnp.where(attn_mask[:, None] != 0, 0.0, -1000.0)
    dots = dots + mask_bias
    attn = jax.nn.softmax(dots, axis=-1)
    out = jnp.einsum('bhnm,bhmd->bhnd', attn, v)
    out = jnp.transpose(out, (0, 2, 1, 3)).reshape(B, N, inner)
    return out @ params['wo'] + params['bo'][0]


if __name__ == "__main__":
    B, N, DIM = 2, 8, 32
    HEADS, DIM_HEAD = 4, 16
    INNER = HEADS * DIM_HEAD

    key = jax.random.PRNGKey(0)
    keys = jax.random.split(key, 10)

    x = jax.random.normal(keys[0], (B, N, DIM), jnp.float32)
    distance = jax.random.normal(keys[1], (B, N, N, 3), jnp.float32)
    attn_mask = (jax.random.uniform(keys[2], (B, N, N)) > 0.2).astype(jnp.int32)

    params = {
        'wqkv': 0.1 * jax.random.normal(keys[3], (DIM, 3 * INNER), jnp.float32),
        'w1':   0.1 * jax.random.normal(keys[4], (3, INNER), jnp.float32),
        'b1':   0.1 * jax.random.normal(keys[5], (1, INNER), jnp.float32),
        'w2':   0.1 * jax.random.normal(keys[6], (INNER, 1), jnp.float32),
        'b2':   0.1 * jax.random.normal(keys[7], (1, 1), jnp.float32),
        'wo':   0.1 * jax.random.normal(keys[8], (INNER, DIM), jnp.float32),
        'bo':   0.1 * jax.random.normal(keys[9], (1, DIM), jnp.float32),
    }

    out = attention_forward(x, distance, attn_mask, params, HEADS, DIM_HEAD)
    out = jax.block_until_ready(out)

    ref = reference_forward(x, distance, attn_mask, params, HEADS, DIM_HEAD)
    assert out.shape == (B, N, DIM)
    assert jnp.allclose(out, ref, rtol=2e-2, atol=2e-2), "mismatch vs reference"

    print("KERNEL_OK")
</pallas_src>

<mosaic_0001>
module attributes {stable_mosaic.version = 11 : i64} {
  func.func @kernel(%arg0: i32, %arg1: memref<2x8x32xbf16, #tpu.memory_space<vmem>>, %arg2: memref<2x8x8xf32, #tpu.memory_space<vmem>>, %arg3: memref<32x192xbf16, #tpu.memory_space<vmem>>, %arg4: memref<64x32xbf16, #tpu.memory_space<vmem>>, %arg5: memref<1x32xf32, #tpu.memory_space<vmem>>, %arg6: memref<2x8x32xf32, #tpu.memory_space<vmem>>) attributes {dimension_semantics = [#tpu.dimension_semantics<parallel>], iteration_bounds = array<i64: 1>, scalar_prefetch = 0 : i64, scratch_operands = 0 : i64, tpu.core_type = #tpu.core_type<tc>, window_params = [{transform_indices = @transform_0, window_bounds = array<i64: 2, 8, 32>}, {transform_indices = @transform_1, window_bounds = array<i64: 2, 8, 8>}, {pipeline_mode = #tpu.pipeline_mode<synchronous>, transform_indices = @transform_2, window_bounds = array<i64: 32, 192>}, {pipeline_mode = #tpu.pipeline_mode<synchronous>, transform_indices = @transform_3, window_bounds = array<i64: 64, 32>}, {pipeline_mode = #tpu.pipeline_mode<synchronous>, transform_indices = @transform_4, window_bounds = array<i64: 1, 32>}, {transform_indices = @transform_5, window_bounds = array<i64: 2, 8, 32>}]} {
    %c0 = arith.constant 0 : index
    %c0_0 = arith.constant 0 : index
    %c0_1 = arith.constant 0 : index
    %0 = vector.load %arg1[%c0, %c0_0, %c0_1] : memref<2x8x32xbf16, #tpu.memory_space<vmem>>, vector<2x8x32xbf16>
    %1 = vector.shape_cast %0 : vector<2x8x32xbf16> to vector<16x32xbf16>
    %c0_2 = arith.constant 0 : index
    %c0_3 = arith.constant 0 : index
    %2 = vector.load %arg3[%c0_2, %c0_3] : memref<32x192xbf16, #tpu.memory_space<vmem>>, vector<32x192xbf16>
    %cst = arith.constant dense<0.000000e+00> : vector<16x192xf32>
    %3 = tpu.matmul %1, %2, %cst {dimension_numbers = #tpu.dot_dimension_numbers<[1], [0], [0], [1], [0, 0, 1, 1], [], []>} : vector<16x32xbf16>, vector<32x192xbf16>, vector<16x192xf32> -> vector<16x192xf32>
    %4 = arith.truncf %3 : vector<16x192xf32> to vector<16x192xbf16>
    %c0_4 = arith.constant 0 : index
    %c0_5 = arith.constant 0 : index
    %c0_6 = arith.constant 0 : index
    %5 = vector.load %arg2[%c0_4, %c0_5, %c0_6] : memref<2x8x8xf32, #tpu.memory_space<vmem>>, vector<1x8x8xf32>
    %6 = vector.shape_cast %5 : vector<1x8x8xf32> to vector<8x8xf32>
    %7 = vector.extract_strided_slice %4 {offsets = [0, 0], sizes = [8, 16], strides = [1, 1]} : vector<16x192xbf16> to vector<8x16xbf16>
    %8 = vector.extract_strided_slice %4 {offsets = [0, 64], sizes = [8, 16], strides = [1, 1]} : vector<16x192xbf16> to vector<8x16xbf16>
    %9 = vector.extract_strided_slice %4 {offsets = [0, 128], sizes = [8, 16], strides = [1, 1]} : vector<16x192xbf16> to vector<8x16xbf16>
    %cst_7 = arith.constant dense<0.000000e+00> : vector<8x8xf32>
    %10 = tpu.matmul %7, %8, %cst_7 {dimension_numbers = #tpu.dot_dimension_numbers<[1], [1], [0], [0], [0, 0, 1, 0], [], []>} : vector<8x16xbf16>, vector<8x16xbf16>, vector<8x8xf32> -> vector<8x8xf32>
    %11 = arith.addf %10, %6 : vector<8x8xf32>
    %cst_8 = arith.constant dense<0xFF800000> : vector<8xf32>
    %12 = vector.multi_reduction <maximumf>, %11, %cst_8 [1] : vector<8x8xf32> to vector<8xf32>
    %13 = vector.shape_cast %12 : vector<8xf32> to vector<8x1xf32>
    %14 = vector.broadcast %13 : vector<8x1xf32> to vector<8x8xf32>
    %15 = arith.subf %11, %14 : vector<8x8xf32>
    %16 = math.exp %15 : vector<8x8xf32>
    %cst_9 = arith.constant dense<0.000000e+00> : vector<8xf32>
    %17 = vector.multi_reduction <add>, %16, %cst_9 [1] : vector<8x8xf32> to vector<8xf32>
    %18 = vector.shape_cast %17 : vector<8xf32> to vector<8x1xf32>
    %19 = tpu.reciprocal %18 {approx = true} : vector<8x1xf32> -> vector<8x1xf32>
    %20 = vector.broadcast %19 : vector<8x1xf32> to vector<8x8xf32>
    %21 = arith.mulf %16, %20 : vector<8x8xf32>
    %22 = arith.truncf %21 : vector<8x8xf32> to vector<8x8xbf16>
    %cst_10 = arith.constant dense<0.000000e+00> : vector<8x16xf32>
    %23 = tpu.matmul %22, %9, %cst_10 {dimension_numbers = #tpu.dot_dimension_numbers<[1], [0], [0], [1], [0, 0, 1, 1], [], []>} : vector<8x8xbf16>, vector<8x16xbf16>, vector<8x16xf32> -> vector<8x16xf32>
    %24 = vector.extract_strided_slice %4 {offsets = [0, 16], sizes = [8, 16], strides = [1, 1]} : vector<16x192xbf16> to vector<8x16xbf16>
    %25 = vector.extract_strided_slice %4 {offsets = [0, 80], sizes = [8, 16], strides = [1, 1]} : vector<16x192xbf16> to vector<8x16xbf16>
    %26 = vector.extract_strided_slice %4 {offsets = [0, 144], sizes = [8, 16], strides = [1, 1]} : vector<16x192xbf16> to vector<8x16xbf16>
    %cst_11 = arith.constant dense<0.000000e+00> : vector<8x8xf32>
    %27 = tpu.matmul %24, %25, %cst_11 {dimension_numbers = #tpu.dot_dimension_numbers<[1], [1], [0], [0], [0, 0, 1, 0], [], []>} : vector<8x16xbf16>, vector<8x16xbf16>, vector<8x8xf32> -> vector<8x8xf32>
    %28 = arith.addf %27, %6 : vector<8x8xf32>
    %cst_12 = arith.constant dense<0xFF800000> : vector<8xf32>
    %29 = vector.multi_reduction <maximumf>, %28, %cst_12 [1] : vector<8x8xf32> to vector<8xf32>
    %30 = vector.shape_cast %29 : vector<8xf32> to vector<8x1xf32>
    %31 = vector.broadcast %30 : vector<8x1xf32> to vector<8x8xf32>
    %32 = arith.subf %28, %31 : vector<8x8xf32>
    %33 = math.exp %32 : vector<8x8xf32>
    %cst_13 = arith.constant dense<0.000000e+00> : vector<8xf32>
    %34 = vector.multi_reduction <add>, %33, %cst_13 [1] : vector<8x8xf32> to vector<8xf32>
    %35 = vector.shape_cast %34 : vector<8xf32> to vector<8x1xf32>
    %36 = tpu.reciprocal %35 {approx = true} : vector<8x1xf32> -> vector<8x1xf32>
    %37 = vector.broadcast %36 : vector<8x1xf32> to vector<8x8xf32>
    %38 = arith.mulf %33, %37 : vector<8x8xf32>
    %39 = arith.truncf %38 : vector<8x8xf32> to vector<8x8xbf16>
    %cst_14 = arith.constant dense<0.000000e+00> : vector<8x16xf32>
    %40 = tpu.matmul %39, %26, %cst_14 {dimension_numbers = #tpu.dot_dimension_numbers<[1], [0], [0], [1], [0, 0, 1, 1], [], []>} : vector<8x8xbf16>, vector<8x16xbf16>, vector<8x16xf32> -> vector<8x16xf32>
    %41 = vector.extract_strided_slice %4 {offsets = [0, 32], sizes = [8, 16], strides = [1, 1]} : vector<16x192xbf16> to vector<8x16xbf16>
    %42 = vector.extract_strided_slice %4 {offsets = [0, 96], sizes = [8, 16], strides = [1, 1]} : vector<16x192xbf16> to vector<8x16xbf16>
    %43 = vector.extract_strided_slice %4 {offsets = [0, 160], sizes = [8, 16], strides = [1, 1]} : vector<16x192xbf16> to vector<8x16xbf16>
    %cst_15 = arith.constant dense<0.000000e+00> : vector<8x8xf32>
    %44 = tpu.matmul %41, %42, %cst_15 {dimension_numbers = #tpu.dot_dimension_numbers<[1], [1], [0], [0], [0, 0, 1, 0], [], []>} : vector<8x16xbf16>, vector<8x16xbf16>, vector<8x8xf32> -> vector<8x8xf32>
    %45 = arith.addf %44, %6 : vector<8x8xf32>
    %cst_16 = arith.constant dense<0xFF800000> : vector<8xf32>
    %46 = vector.multi_reduction <maximumf>, %45, %cst_16 [1] : vector<8x8xf32> to vector<8xf32>
    %47 = vector.shape_cast %46 : vector<8xf32> to vector<8x1xf32>
    %48 = vector.broadcast %47 : vector<8x1xf32> to vector<8x8xf32>
    %49 = arith.subf %45, %48 : vector<8x8xf32>
    %50 = math.exp %49 : vector<8x8xf32>
    %cst_17 = arith.constant dense<0.000000e+00> : vector<8xf32>
    %51 = vector.multi_reduction <add>, %50, %cst_17 [1] : vector<8x8xf32> to vector<8xf32>
    %52 = vector.shape_cast %51 : vector<8xf32> to vector<8x1xf32>
    %53 = tpu.reciprocal %52 {approx = true} : vector<8x1xf32> -> vector<8x1xf32>
    %54 = vector.broadcast %53 : vector<8x1xf32> to vector<8x8xf32>
    %55 = arith.mulf %50, %54 : vector<8x8xf32>
    %56 = arith.truncf %55 : vector<8x8xf32> to vector<8x8xbf16>
    %cst_18 = arith.constant dense<0.000000e+00> : vector<8x16xf32>
    %57 = tpu.matmul %56, %43, %cst_18 {dimension_numbers = #tpu.dot_dimension_numbers<[1], [0], [0], [1], [0, 0, 1, 1], [], []>} : vector<8x8xbf16>, vector<8x16xbf16>, vector<8x16xf32> -> vector<8x16xf32>
    %58 = vector.extract_strided_slice %4 {offsets = [0, 48], sizes = [8, 16], strides = [1, 1]} : vector<16x192xbf16> to vector<8x16xbf16>
    %59 = vector.extract_strided_slice %4 {offsets = [0, 112], sizes = [8, 16], strides = [1, 1]} : vector<16x192xbf16> to vector<8x16xbf16>
    %60 = vector.extract_strided_slice %4 {offsets = [0, 176], sizes = [8, 16], strides = [1, 1]} : vector<16x192xbf16> to vector<8x16xbf16>
    %cst_19 = arith.constant dense<0.000000e+00> : vector<8x8xf32>
    %61 = tpu.matmul %58, %59, %cst_19 {dimension_numbers = #tpu.dot_dimension_numbers<[1], [1], [0], [0], [0, 0, 1, 0], [], []>} : vector<8x16xbf16>, vector<8x16xbf16>, vector<8x8xf32> -> vector<8x8xf32>
    %62 = arith.addf %61, %6 : vector<8x8xf32>
    %cst_20 = arith.constant dense<0xFF800000> : vector<8xf32>
    %63 = vector.multi_reduction <maximumf>, %62, %cst_20 [1] : vector<8x8xf32> to vector<8xf32>
    %64 = vector.shape_cast %63 : vector<8xf32> to vector<8x1xf32>
    %65 = vector.broadcast %64 : vector<8x1xf32> to vector<8x8xf32>
    %66 = arith.subf %62, %65 : vector<8x8xf32>
    %67 = math.exp %66 : vector<8x8xf32>
    %cst_21 = arith.constant dense<0.000000e+00> : vector<8xf32>
    %68 = vector.multi_reduction <add>, %67, %cst_21 [1] : vector<8x8xf32> to vector<8xf32>
    %69 = vector.shape_cast %68 : vector<8xf32> to vector<8x1xf32>
    %70 = tpu.reciprocal %69 {approx = true} : vector<8x1xf32> -> vector<8x1xf32>
    %71 = vector.broadcast %70 : vector<8x1xf32> to vector<8x8xf32>
    %72 = arith.mulf %67, %71 : vector<8x8xf32>
    %73 = arith.truncf %72 : vector<8x8xf32> to vector<8x8xbf16>
    %cst_22 = arith.constant dense<0.000000e+00> : vector<8x16xf32>
    %74 = tpu.matmul %73, %60, %cst_22 {dimension_numbers = #tpu.dot_dimension_numbers<[1], [0], [0], [1], [0, 0, 1, 1], [], []>} : vector<8x8xbf16>, vector<8x16xbf16>, vector<8x16xf32> -> vector<8x16xf32>
    %75 = tpu.concatenate %23, %40, %57, %74 in 1 : vector<8x16xf32>, vector<8x16xf32>, vector<8x16xf32>, vector<8x16xf32> -> vector<8x64xf32>
    %c1 = arith.constant 1 : index
    %c0_23 = arith.constant 0 : index
    %c0_24 = arith.constant 0 : index
    %76 = vector.load %arg2[%c1, %c0_23, %c0_24] : memref<2x8x8xf32, #tpu.memory_space<vmem>>, vector<1x8x8xf32>
    %77 = vector.shape_cast %76 : vector<1x8x8xf32> to vector<8x8xf32>
    %78 = vector.extract_strided_slice %4 {offsets = [8, 0], sizes = [8, 16], strides = [1, 1]} : vector<16x192xbf16> to vector<8x16xbf16>
    %79 = vector.extract_strided_slice %4 {offsets = [8, 64], sizes = [8, 16], strides = [1, 1]} : vector<16x192xbf16> to vector<8x16xbf16>
    %80 = vector.extract_strided_slice %4 {offsets = [8, 128], sizes = [8, 16], strides = [1, 1]} : vector<16x192xbf16> to vector<8x16xbf16>
    %cst_25 = arith.constant dense<0.000000e+00> : vector<8x8xf32>
    %81 = tpu.matmul %78, %79, %cst_25 {dimension_numbers = #tpu.dot_dimension_numbers<[1], [1], [0], [0], [0, 0, 1, 0], [], []>} : vector<8x16xbf16>, vector<8x16xbf16>, vector<8x8xf32> -> vector<8x8xf32>
    %82 = arith.addf %81, %77 : vector<8x8xf32>
    %cst_26 = arith.constant dense<0xFF800000> : vector<8xf32>
    %83 = vector.multi_reduction <maximumf>, %82, %cst_26 [1] : vector<8x8xf32> to vector<8xf32>
    %84 = vector.shape_cast %83 : vector<8xf32> to vector<8x1xf32>
    %85 = vector.broadcast %84 : vector<8x1xf32> to vector<8x8xf32>
    %86 = arith.subf %82, %85 : vector<8x8xf32>
    %87 = math.exp %86 : vector<8x8xf32>
    %cst_27 = arith.constant dense<0.000000e+00> : vector<8xf32>
    %88 = vector.multi_reduction <add>, %87, %cst_27 [1] : vector<8x8xf32> to vector<8xf32>
    %89 = vector.shape_cast %88 : vector<8xf32> to vector<8x1xf32>
    %90 = tpu.reciprocal %89 {approx = true} : vector<8x1xf32> -> vector<8x1xf32>
    %91 = vector.broadcast %90 : vector<8x1xf32> to vector<8x8xf32>
    %92 = arith.mulf %87, %91 : vector<8x8xf32>
    %93 = arith.truncf %92 : vector<8x8xf32> to vector<8x8xbf16>
    %cst_28 = arith.constant dense<0.000000e+00> : vector<8x16xf32>
    %94 = tpu.matmul %93, %80, %cst_28 {dimension_numbers = #tpu.dot_dimension_numbers<[1], [0], [0], [1], [0, 0, 1, 1], [], []>} : vector<8x8xbf16>, vector<8x16xbf16>, vector<8x16xf32> -> vector<8x16xf32>
    %95 = vector.extract_strided_slice %4 {offsets = [8, 16], sizes = [8, 16], strides = [1, 1]} : vector<16x192xbf16> to vector<8x16xbf16>
    %96 = vector.extract_strided_slice %4 {offsets = [8, 80], sizes = [8, 16], strides = [1, 1]} : vector<16x192xbf16> to vector<8x16xbf16>
    %97 = vector.extract_strided_slice %4 {offsets = [8, 144], sizes = [8, 16], strides = [1, 1]} : vector<16x192xbf16> to vector<8x16xbf16>
    %cst_29 = arith.constant dense<0.000000e+00> : vector<8x8xf32>
    %98 = tpu.matmul %95, %96, %cst_29 {dimension_numbers = #tpu.dot_dimension_numbers<[1], [1], [0], [0], [0, 0, 1, 0], [], []>} : vector<8x16xbf16>, vector<8x16xbf16>, vector<8x8xf32> -> vector<8x8xf32>
    %99 = arith.addf %98, %77 : vector<8x8xf32>
    %cst_30 = arith.constant dense<0xFF800000> : vector<8xf32>
    %100 = vector.multi_reduction <maximumf>, %99, %cst_30 [1] : vector<8x8xf32> to vector<8xf32>
    %101 = vector.shape_cast %100 : vector<8xf32> to vector<8x1xf32>
    %102 = vector.broadcast %101 : vector<8x1xf32> to vector<8x8xf32>
    %103 = arith.subf %99, %102 : vector<8x8xf32>
    %104 = math.exp %103 : vector<8x8xf32>
    %cst_31 = arith.constant dense<0.000000e+00> : vector<8xf32>
    %105 = vector.multi_reduction <add>, %104, %cst_31 [1] : vector<8x8xf32> to vector<8xf32>
    %106 = vector.shape_cast %105 : vector<8xf32> to vector<8x1xf32>
    %107 = tpu.reciprocal %106 {approx = true} : vector<8x1xf32> -> vector<8x1xf32>
    %108 = vector.broadcast %107 : vector<8x1xf32> to vector<8x8xf32>
    %109 = arith.mulf %104, %108 : vector<8x8xf32>
    %110 = arith.truncf %109 : vector<8x8xf32> to vector<8x8xbf16>
    %cst_32 = arith.constant dense<0.000000e+00> : vector<8x16xf32>
    %111 = tpu.matmul %110, %97, %cst_32 {dimension_numbers = #tpu.dot_dimension_numbers<[1], [0], [0], [1], [0, 0, 1, 1], [], []>} : vector<8x8xbf16>, vector<8x16xbf16>, vector<8x16xf32> -> vector<8x16xf32>
    %112 = vector.extract_strided_slice %4 {offsets = [8, 32], sizes = [8, 16], strides = [1, 1]} : vector<16x192xbf16> to vector<8x16xbf16>
    %113 = vector.extract_strided_slice %4 {offsets = [8, 96], sizes = [8, 16], strides = [1, 1]} : vector<16x192xbf16> to vector<8x16xbf16>
    %114 = vector.extract_strided_slice %4 {offsets = [8, 160], sizes = [8, 16], strides = [1, 1]} : vector<16x192xbf16> to vector<8x16xbf16>
    %cst_33 = arith.constant dense<0.000000e+00> : vector<8x8xf32>
    %115 = tpu.matmul %112, %113, %cst_33 {dimension_numbers = #tpu.dot_dimension_numbers<[1], [1], [0], [0], [0, 0, 1, 0], [], []>} : vector<8x16xbf16>, vector<8x16xbf16>, vector<8x8xf32> -> vector<8x8xf32>
    %116 = arith.addf %115, %77 : vector<8x8xf32>
    %cst_34 = arith.constant dense<0xFF800000> : vector<8xf32>
    %117 = vector.multi_reduction <maximumf>, %116, %cst_34 [1] : vector<8x8xf32> to vector<8xf32>
    %118 = vector.shape_cast %117 : vector<8xf32> to vector<8x1xf32>
    %119 = vector.broadcast %118 : vector<8x1xf32> to vector<8x8xf32>
    %120 = arith.subf %116, %119 : vector<8x8xf32>
    %121 = math.exp %120 : vector<8x8xf32>
    %cst_35 = arith.constant dense<0.000000e+00> : vector<8xf32>
    %122 = vector.multi_reduction <add>, %121, %cst_35 [1] : vector<8x8xf32> to vector<8xf32>
    %123 = vector.shape_cast %122 : vector<8xf32> to vector<8x1xf32>
    %124 = tpu.reciprocal %123 {approx = true} : vector<8x1xf32> -> vector<8x1xf32>
    %125 = vector.broadcast %124 : vector<8x1xf32> to vector<8x8xf32>
    %126 = arith.mulf %121, %125 : vector<8x8xf32>
    %127 = arith.truncf %126 : vector<8x8xf32> to vector<8x8xbf16>
    %cst_36 = arith.constant dense<0.000000e+00> : vector<8x16xf32>
    %128 = tpu.matmul %127, %114, %cst_36 {dimension_numbers = #tpu.dot_dimension_numbers<[1], [0], [0], [1], [0, 0, 1, 1], [], []>} : vector<8x8xbf16>, vector<8x16xbf16>, vector<8x16xf32> -> vector<8x16xf32>
    %129 = vector.extract_strided_slice %4 {offsets = [8, 48], sizes = [8, 16], strides = [1, 1]} : vector<16x192xbf16> to vector<8x16xbf16>
    %130 = vector.extract_strided_slice %4 {offsets = [8, 112], sizes = [8, 16], strides = [1, 1]} : vector<16x192xbf16> to vector<8x16xbf16>
    %131 = vector.extract_strided_slice %4 {offsets = [8, 176], sizes = [8, 16], strides = [1, 1]} : vector<16x192xbf16> to vector<8x16xbf16>
    %cst_37 = arith.constant dense<0.000000e+00> : vector<8x8xf32>
    %132 = tpu.matmul %129, %130, %cst_37 {dimension_numbers = #tpu.dot_dimension_numbers<[1], [1], [0], [0], [0, 0, 1, 0], [], []>} : vector<8x16xbf16>, vector<8x16xbf16>, vector<8x8xf32> -> vector<8x8xf32>
    %133 = arith.addf %132, %77 : vector<8x8xf32>
    %cst_38 = arith.constant dense<0xFF800000> : vector<8xf32>
    %134 = vector.multi_reduction <maximumf>, %133, %cst_38 [1] : vector<8x8xf32> to vector<8xf32>
    %135 = vector.shape_cast %134 : vector<8xf32> to vector<8x1xf32>
    %136 = vector.broadcast %135 : vector<8x1xf32> to vector<8x8xf32>
    %137 = arith.subf %133, %136 : vector<8x8xf32>
    %138 = math.exp %137 : vector<8x8xf32>
    %cst_39 = arith.constant dense<0.000000e+00> : vector<8xf32>
    %139 = vector.multi_reduction <add>, %138, %cst_39 [1] : vector<8x8xf32> to vector<8xf32>
    %140 = vector.shape_cast %139 : vector<8xf32> to vector<8x1xf32>
    %141 = tpu.reciprocal %140 {approx = true} : vector<8x1xf32> -> vector<8x1xf32>
    %142 = vector.broadcast %141 : vector<8x1xf32> to vector<8x8xf32>
    %143 = arith.mulf %138, %142 : vector<8x8xf32>
    %144 = arith.truncf %143 : vector<8x8xf32> to vector<8x8xbf16>
    %cst_40 = arith.constant dense<0.000000e+00> : vector<8x16xf32>
    %145 = tpu.matmul %144, %131, %cst_40 {dimension_numbers = #tpu.dot_dimension_numbers<[1], [0], [0], [1], [0, 0, 1, 1], [], []>} : vector<8x8xbf16>, vector<8x16xbf16>, vector<8x16xf32> -> vector<8x16xf32>
    %146 = tpu.concatenate %94, %111, %128, %145 in 1 : vector<8x16xf32>, vector<8x16xf32>, vector<8x16xf32>, vector<8x16xf32> -> vector<8x64xf32>
    %147 = tpu.concatenate %75, %146 in 0 : vector<8x64xf32>, vector<8x64xf32> -> vector<16x64xf32>
    %148 = arith.truncf %147 : vector<16x64xf32> to vector<16x64xbf16>
    %c0_41 = arith.constant 0 : index
    %c0_42 = arith.constant 0 : index
    %149 = vector.load %arg4[%c0_41, %c0_42] : memref<64x32xbf16, #tpu.memory_space<vmem>>, vector<64x32xbf16>
    %cst_43 = arith.constant dense<0.000000e+00> : vector<16x32xf32>
    %150 = tpu.matmul %148, %149, %cst_43 {dimension_numbers = #tpu.dot_dimension_numbers<[1], [0], [0], [1], [0, 0, 1, 1], [], []>} : vector<16x64xbf16>, vector<64x32xbf16>, vector<16x32xf32> -> vector<16x32xf32>
    %c0_44 = arith.constant 0 : index
    %c0_45 = arith.constant 0 : index
    %151 = vector.load %arg5[%c0_44, %c0_45] : memref<1x32xf32, #tpu.memory_space<vmem>>, vector<1x32xf32>
    %152 = vector.broadcast %151 : vector<1x32xf32> to vector<16x32xf32>
    %153 = arith.addf %150, %152 : vector<16x32xf32>
    %154 = vector.shape_cast %153 : vector<16x32xf32> to vector<2x8x32xf32>
    %c0_46 = arith.constant 0 : index
    %c0_47 = arith.constant 0 : index
    %c0_48 = arith.constant 0 : index
    %155 = vector.load %arg6[%c0_46, %c0_47, %c0_48] : memref<2x8x32xf32, #tpu.memory_space<vmem>>, vector<2x8x32xf32>
    tpu.vector_store %arg6[%c0_46, %c0_47, %c0_48], %154 {strides = array<i32>} : memref<2x8x32xf32, #tpu.memory_space<vmem>>, vector<2x8x32xf32>,
    return
  }
  func.func @transform_0(%arg0: i32) -> (i32, i32, i32) {
    %c0_i32 = arith.constant 0 : i32
    %c0_i32_0 = arith.constant 0 : i32
    %c0_i32_1 = arith.constant 0 : i32
    return %arg0, %c0_i32, %c0_i32_0 : i32, i32, i32
  }
  func.func @transform_1(%arg0: i32) -> (i32, i32, i32) {
    %c0_i32 = arith.constant 0 : i32
    %c0_i32_0 = arith.constant 0 : i32
    %c0_i32_1 = arith.constant 0 : i32
    return %arg0, %c0_i32, %c0_i32_0 : i32, i32, i32
  }
  func.func @transform_2(%arg0: i32) -> (i32, i32) {
    %c0_i32 = arith.constant 0 : i32
    %c0_i32_0 = arith.constant 0 : i32
    %c0_i32_1 = arith.constant 0 : i32
    return %c0_i32, %c0_i32_0 : i32, i32
  }
  func.func @transform_3(%arg0: i32) -> (i32, i32) {
    %c0_i32 = arith.constant 0 : i32
    %c0_i32_0 = arith.constant 0 : i32
    %c0_i32_1 = arith.constant 0 : i32
    return %c0_i32, %c0_i32_0 : i32, i32
  }
  func.func @transform_4(%arg0: i32) -> (i32, i32) {
    %c0_i32 = arith.constant 0 : i32
    %c0_i32_0 = arith.constant 0 : i32
    %c0_i32_1 = arith.constant 0 : i32
    return %c0_i32, %c0_i32_0 : i32, i32
  }
  func.func @transform_5(%arg0: i32) -> (i32, i32, i32) {
    %c0_i32 = arith.constant 0 : i32
    %c0_i32_0 = arith.constant 0 : i32
    %c0_i32_1 = arith.constant 0 : i32
    return %arg0, %c0_i32, %c0_i32_0 : i32, i32, i32
  }
}

</mosaic_0001>

<bundles_post_ra>
// kernel: tpu_custom_call.1
= control target key start
LH: loop header
LB: loop body
LE: loop exit
PB: predicated region body
PF: predicated region fallthrough
CT: control target
= control target key end

     0   :  { %10 = vsyncpa [#allocation3], 0  ;;  %s1677_s0 = inlined_call_operand.hbm [shape: bf16[2,8,32], index: 0, kind: input, shape index: {}]   ;;  %s1678_s1 = inlined_call_operand.vmem [shape: f32[2,8,8], index: 1, kind: input, shape index: {}]   ;;  %s1679_s2 = inlined_call_operand.vmem [shape: bf16[32,192], index: 2, kind: input, shape index: {}]   ;;  %s1680_s3 = inlined_call_operand.vmem [shape: bf16[64,32], index: 3, kind: input, shape index: {}]   ;;  %s1681_s4 = inlined_call_operand.vmem [shape: f32[1,32], index: 4, kind: input, shape index: {}]   ;;  %s1682_s5 = inlined_call_operand.hbm [shape: f32[2,8,32], index: 5, kind: output, shape index: {}]  }
   0x1   :  { %11 = vsyncpa [#allocation4], 0  ;;  %s1424_s18 = smov [#allocation2]  }
   0x2   :  { %s17_s19 = sshll.u32 %s1424_s18, 4  ;;  %s18_s19 = int_to_ptr.vmem [resolvable:$true] %s17_s19 }
   0x3   :  { %s1388_s20 = scalar_lea.vmem %s18_s19, 128  ;;  %p1393_p1 = scmp.lt.s32.totalorder %s18_s19, %s18_s19 }
   0x4   :  { %p1389_p0 = scmp.ne.s32.totalorder %s18_s19, %s1388_s20  ;;  %p1394_p2 = scmp.lt.s32.totalorder %s1388_s20, %s1388_s20 }
   0x6   :  { %p1395_p3 = por %p1394_p2, %p1393_p1 }
   0x8   :  { %p1396_p4 = pnand %p1395_p3, %p1389_p0 }
   0xa   :  { %1399 = shalt.err (!%p1396_p4)
}
   0xb   :  { %s1425_s21 = smov 64   ;;  %s1426_s22 = smov 4  }
   0xc   :  { %23 = dma.hbm_to_vmem [thread:$0]  %s1677_s0, 128, %s18_s19, [#allocation3], %s1425_s21, %s1425_s21, %s1426_s22  }
   0xd   :  { %1420 = dma.done.wait [#allocation3], 128  }
   0xe   :  { %1421 = vsyncadd [#allocation3], 4294967168  ;;  %v1427_v0 = vmov 0   ;;  %v1337_v1 = vld [vmem:[%s1679_s2 + $0x14] ss:$8 sps:$4 sm:$0xff]   ;;  %v1343_v5 = vld [vmem:[#allocation2] sm:$0xff]  }
   0xf   :  { %103 = vmatprep.mubr.bf16.mxu0 %v1427_v0  ;;  %v1339_v2 = vld [vmem:[%s1679_s2 + $0x10] ss:$8 sps:$4 sm:$0xff]   ;;  %83 = vmatprep.subr.bf16.mxu0 %v1337_v1  ;;  %v1340_v3 = vld [vmem:[%s1679_s2 + $0x4] ss:$8 sps:$4 sm:$0xff]   ;;  %v1342_v4 = vld [vmem:[%s1679_s2] ss:$8 sps:$4 sm:$0xff]  }
  0x10   :  { %84 = vmatpush1.bf16.msra.mxu0 %v1339_v2  ;;  %vm67_vm0 = vcmask 261120   ;;  %v1428_v6 = vmov 0.0   ;;  %vm1429_vm1 = vmmov 0   ;;  %vm183_vm2 = vcmask 1043456   ;;  %s1430_s2 = smov 112   ;;  %s1431_s7 = smov 32  }
  0x11   :  { %85 = vmatprep.subr.bf16.mxu0 %v1340_v3  ;;  %1199 = vmatprep.subr.bf16.mxu1 %v1428_v6  ;;  %s1432_s8 = smov 48   ;;  %s1433_s9 = smov 16   ;;  %vm120_vm3 = vcmask 130048   ;;  %v116_v37 = vld [vmem:[%s1678_s1] sm:$0xff]  ;;  %vm167_vm4 = vcmask 64512   ;;  %v1147_v62 = vld [vmem:[%s1678_s1 + $0x8] sm:$0xff] }
  0x12   :  { %1201 = vmatprep.mubr.msk.bf16.mxu1 %vm1429_vm1, %v1428_v6  ;;  %s1434_s10 = smov 96   ;;  %s1435_s11 = smov 80   ;;  %vm572_vm5 = vcmask 392192   ;;  %vm1069_vm6 = vcmask 523264  }
  0x13   :  { %s1436_s24 = smov [#allocation5]  }
  0x14   :  { %86 = vmatpush1.bf16.msra.mxu0 %v1342_v4  ;;  %s1121_s25 = sshll.u32 %s1436_s24, 4  ;;  %s1122_s25 = int_to_ptr.vmem [resolvable:$true] %s1121_s25 }
  0x15   :  { %1205 = vmatprep.subr.bf16.mxu0 %v1428_v6  ;;  %s1400_s26 = scalar_lea.vmem %s1122_s25, 256  ;;  %p1405_p6 = scmp.lt.s32.totalorder %s1122_s25, %s1122_s25 }
  0x16   :  { %p1401_p5 = scmp.ne.s32.totalorder %s1122_s25, %s1400_s26  ;;  %p1406_p7 = scmp.lt.s32.totalorder %s1400_s26, %s1400_s26 }
  0x17   :  { %1138 = vmatmul.mubr.msk.bf16.vlgmr.msra.gmra.mxu0 %vm67_vm0, %v1343_v5 }
  0x18   :  { %1207 = vmatprep.mubr.msk.bf16.mxu0 %vm1429_vm1, %v1428_v6  ;;  %p1407_p8 = por %p1406_p7, %p1405_p6 }
  0x1a   :  { %p1408_p9 = pnand %p1407_p8, %p1401_p5 }
  0xd7   :  { %v105_v7 = vpop.f32.mrf.mxu0 }
  0xd9   :  { %v107_v8 = vpop.f32.mrf.mxu0 }
  0xdb   :  { %v109_v9 = vpop.f32.mrf.mxu0 }
  0xdc   :  { %v114_v10 = vpack.c.bf16 %v109_v9, %v105_v7 }
  0xdd   :  { %v111_v11 = vpop.f32.mrf.mxu0 }
  0xde   :  { %v1493_v12 = vpack.c.bf16 %v111_v11, %v107_v8  ;;  %227 = vrot.lane.b32.xlu1 %v114_v10, %s1430_s2  ;;  %118 = vrot.lane.b32.xlu0 %v114_v10, %s1425_s21  ;;  %v576_v14 = vrot.slane %v114_v10, 4 }
  0xe0   :  { %v185_v13 = vsel %vm183_vm2, %v1493_v12, 0 }
  0xe1   :  { %1206 = vmatpush3.bf16.msra.mxu0 %v185_v13 }
  0xe2   :  { %340 = vrot.lane.b32.xlu1 %v114_v10, %s1431_s7  ;;  %229 = vrot.lane.b32.xlu0 %v114_v10, %s1432_s8 }
  0xe3   :  { %1217 = vmatprep.subr.bf16.mxu0 %v1428_v6 }
  0xe6   :  { %450 = vrot.lane.b32.xlu1 %v114_v10, %s1433_s9  ;;  %338 = vrot.lane.b32.xlu0 %v114_v10, %s1434_s10 }
  0xea   :  { %448 = vrot.lane.b32.xlu0 %v114_v10, %s1435_s11  ;;  %577 = vrot.lane.b32.xlu1 %v576_v14, %s1425_s21 }
  0xee   :  { %686 = vrot.lane.b32.xlu0 %v576_v14, %s1432_s8  ;;  %684 = vrot.lane.b32.xlu1 %v576_v14, %s1430_s2 }
  0xf2   :  { %796 = vrot.lane.b32.xlu0 %v576_v14, %s1431_s7  ;;  %794 = vrot.lane.b32.xlu1 %v576_v14, %s1434_s10 }
  0xf6   :  { %906 = vrot.lane.b32.xlu0 %v576_v14, %s1433_s9  ;;  %904 = vrot.lane.b32.xlu1 %v576_v14, %s1435_s11 }
 0x150   :  { %v119_v15 = vpop.permute.xlu0 %118  ;;  %v228_v18 = vpop.permute.xlu1 %227 }
 0x151   :  { %v125_v16 = vsel %vm120_vm3, %v119_v15, 0 }
 0x152   :  { %1200 = vmatpush3.bf16.xpose.msra.mxu1 %v125_v16 }
 0x153   :  { %1211 = vmatprep.subr.bf16.mxu1 %v1428_v6 }
 0x154   :  { %v230_v17 = vpop.permute.xlu0 %229  ;;  %v341_v20 = vpop.permute.xlu1 %340 }
 0x155   :  { %v235_v19 = vsel %vm120_vm3, %v230_v17, 0  ;;  %v346_v21 = vsel %vm120_vm3, %v341_v20, 0 }
 0x158   :  { %v451_v22 = vpop.permute.xlu1 %450  ;;  %v339_v23 = vpop.permute.xlu0 %338 }
 0x159   :  { %1202 = vmatmul.mubr.msk.bf16.vlgmr.msra.gmra.mxu1 %vm120_vm3, %v114_v10  ;;  %v456_v24 = vsel %vm120_vm3, %v451_v22, 0 }
 0x15a   :  { %1212 = vmatpush3.bf16.xpose.msra.mxu1 %v235_v19  ;;  %1213 = vmatprep.mubr.msk.bf16.mxu1 %vm1429_vm1, %v1428_v6 }
 0x15b   :  { %1223 = vmatprep.subr.bf16.mxu1 %v1428_v6 }
 0x15c   :  { %v578_v25 = vpop.permute.xlu1 %577  ;;  %v449_v26 = vpop.permute.xlu0 %448 }
 0x15d   :  { %v583_v27 = vsel %vm120_vm3, %v578_v25, 0 }
 0x160   :  { %v687_v28 = vpop.permute.xlu0 %686  ;;  %v685_v31 = vpop.permute.xlu1 %684 }
 0x161   :  { %1214 = vmatmul.mubr.msk.bf16.vlgmr.msra.gmra.mxu1 %vm120_vm3, %v228_v18  ;;  %v692_v29 = vsel %vm120_vm3, %v687_v28, 0 }
 0x162   :  { %1224 = vmatpush3.bf16.xpose.msra.mxu1 %v346_v21  ;;  %1225 = vmatprep.mubr.msk.bf16.mxu1 %vm1429_vm1, %v1428_v6 }
 0x163   :  { %1235 = vmatprep.subr.bf16.mxu1 %v1428_v6 }
 0x164   :  { %v797_v30 = vpop.permute.xlu0 %796  ;;  %v795_v34 = vpop.permute.xlu1 %794 }
 0x165   :  { %v802_v32 = vsel %vm120_vm3, %v797_v30, 0 }
 0x168   :  { %v907_v33 = vpop.permute.xlu0 %906  ;;  %v905_v36 = vpop.permute.xlu1 %904 }
 0x169   :  { %1226 = vmatmul.mubr.msk.bf16.vlgmr.msra.gmra.mxu1 %vm120_vm3, %v339_v23  ;;  %v912_v35 = vsel %vm120_vm3, %v907_v33, 0 }
 0x16a   :  { %1236 = vmatpush3.bf16.xpose.msra.mxu1 %v456_v24  ;;  %1237 = vmatprep.mubr.msk.bf16.mxu1 %vm1429_vm1, %v1428_v6 }
 0x16b   :  { %1247 = vmatprep.subr.bf16.mxu1 %v1428_v6 }
 0x171   :  { %1238 = vmatmul.mubr.msk.bf16.vlgmr.msra.gmra.mxu1 %vm120_vm3, %v449_v26 }
 0x172   :  { %1248 = vmatpush3.bf16.xpose.msra.mxu1 %v583_v27  ;;  %1249 = vmatprep.mubr.msk.bf16.mxu1 %vm1429_vm1, %v1428_v6 }
 0x173   :  { %1259 = vmatprep.subr.bf16.mxu1 %v1428_v6 }
 0x179   :  { %1250 = vmatmul.mubr.msk.bf16.vlgmr.msra.gmra.mxu1 %vm120_vm3, %v576_v14 }
 0x17a   :  { %1260 = vmatpush3.bf16.xpose.msra.mxu1 %v692_v29  ;;  %1261 = vmatprep.mubr.msk.bf16.mxu1 %vm1429_vm1, %v1428_v6 }
 0x17b   :  { %1271 = vmatprep.subr.bf16.mxu1 %v1428_v6 }
 0x181   :  { %1262 = vmatmul.mubr.msk.bf16.vlgmr.msra.gmra.mxu1 %vm120_vm3, %v685_v31 }
 0x182   :  { %1272 = vmatpush3.bf16.xpose.msra.mxu1 %v802_v32  ;;  %1273 = vmatprep.mubr.msk.bf16.mxu1 %vm1429_vm1, %v1428_v6 }
 0x183   :  { %1283 = vmatprep.subr.bf16.mxu1 %v1428_v6 }
 0x189   :  { %1274 = vmatmul.mubr.msk.bf16.vlgmr.msra.gmra.mxu1 %vm120_vm3, %v795_v34 }
 0x18a   :  { %1284 = vmatpush3.bf16.xpose.msra.mxu1 %v912_v35  ;;  %1285 = vmatprep.mubr.msk.bf16.mxu1 %vm1429_vm1, %v1428_v6 }
 0x18b   :  { %1295 = vmatprep.subr.bf16.mxu1 %v1428_v6 }
 0x191   :  { %1286 = vmatmul.mubr.msk.bf16.vlgmr.msra.gmra.mxu1 %vm120_vm3, %v905_v36 }
 0x192   :  { %1303 = vmatprep.mubr.msk.bf16.mxu1 %vm1429_vm1, %v1428_v6 }
 0x219   :  { %v161_v38 = vpop.f32.mrf.mxu1 }
 0x21a   :  { %v162_v39 = vadd.f32 %v161_v38, %v116_v37 }
 0x21b   :  { %v1203_v40 = vpop.f32.mrf.mxu1 }
 0x21c   :  { %v168_v41 = vsel %vm167_vm4, %v162_v39, -inf }
 0x21d   :  { %v164_v42 = vpop.f32.mrf.mxu1  ;;  %169 = vmax.xlane.f32.xlu0 %v168_v41 }
 0x21f   :  { %v1204_v43 = vpop.f32.mrf.mxu1 }
 0x221   :  { %v271_v44 = vpop.f32.mrf.mxu1 }
 0x222   :  { %v272_v45 = vadd.f32 %v271_v44, %v116_v37 }
 0x223   :  { %v1215_v46 = vpop.f32.mrf.mxu1 }
 0x224   :  { %v277_v47 = vsel %vm167_vm4, %v272_v45, -inf }
 0x225   :  { %v274_v48 = vpop.f32.mrf.mxu1  ;;  %278 = vmax.xlane.f32.xlu1 %v277_v47 }
 0x227   :  { %v1216_v49 = vpop.f32.mrf.mxu1 }
 0x229   :  { %v382_v50 = vpop.f32.mrf.mxu1 }
 0x22a   :  { %v383_v51 = vadd.f32 %v382_v50, %v116_v37 }
 0x22b   :  { %v1227_v52 = vpop.f32.mrf.mxu1 }
 0x22c   :  { %v388_v53 = vsel %vm167_vm4, %v383_v51, -inf }
 0x22d   :  { %v385_v54 = vpop.f32.mrf.mxu1  ;;  %389 = vmax.xlane.f32.xlu0 %v388_v53 }
 0x22f   :  { %v1228_v55 = vpop.f32.mrf.mxu1 }
 0x231   :  { %v492_v56 = vpop.f32.mrf.mxu1 }
 0x232   :  { %v493_v57 = vadd.f32 %v492_v56, %v116_v37 }
 0x233   :  { %v1239_v58 = vpop.f32.mrf.mxu1 }
 0x234   :  { %v498_v59 = vsel %vm167_vm4, %v493_v57, -inf }
 0x235   :  { %v495_v60 = vpop.f32.mrf.mxu1  ;;  %499 = vmax.xlane.f32.xlu0 %v498_v59 }
 0x237   :  { %v1240_v61 = vpop.f32.mrf.mxu1 }
 0x239   :  { %v619_v63 = vpop.f32.mrf.mxu1 }
 0x23a   :  { %v1562_v0 = vadd.f32 %v1147_v62, %v619_v63 }
 0x23b   :  { %v1251_v1 = vpop.f32.mrf.mxu1 }
 0x23c   :  { %v625_v2 = vsel %vm167_vm4, %v1562_v0, -inf  ;;  %v637_v1 = vrot.slane %v1493_v12, 4 }
 0x23d   :  { %626 = vmax.xlane.f32.xlu1 %v625_v2  ;;  %v622_v3 = vpop.f32.mrf.mxu1 }
 0x23f   :  { %v1252_v4 = vpop.f32.mrf.mxu1 }
 0x241   :  { %v728_v5 = vpop.f32.mrf.mxu1 }
 0x242   :  { %v729_v7 = vadd.f32 %v1147_v62, %v728_v5 }
 0x243   :  { %v1263_v8 = vpop.f32.mrf.mxu1 }
 0x244   :  { %v734_v9 = vsel %vm167_vm4, %v729_v7, -inf }
 0x245   :  { %735 = vmax.xlane.f32.xlu0 %v734_v9  ;;  %v731_v10 = vpop.f32.mrf.mxu1 }
 0x247   :  { %v1264_v11 = vpop.f32.mrf.mxu1 }
 0x249   :  { %v838_v13 = vpop.f32.mrf.mxu1 }
 0x24a   :  { %v839_v14 = vadd.f32 %v1147_v62, %v838_v13 }
 0x24b   :  { %v1275_v15 = vpop.f32.mrf.mxu1 }
 0x24c   :  { %v844_v16 = vsel %vm167_vm4, %v839_v14, -inf }
 0x24d   :  { %845 = vmax.xlane.f32.xlu1 %v844_v16  ;;  %v841_v17 = vpop.f32.mrf.mxu1 }
 0x24f   :  { %v1276_v18 = vpop.f32.mrf.mxu1 }
 0x251   :  { %v948_v19 = vpop.f32.mrf.mxu1 }
 0x252   :  { %v949_v20 = vadd.f32 %v1147_v62, %v948_v19 }
 0x253   :  { %v1287_v21 = vpop.f32.mrf.mxu1 }
 0x254   :  { %v954_v22 = vsel %vm167_vm4, %v949_v20, -inf }
 0x255   :  { %955 = vmax.xlane.f32.xlu0 %v954_v22  ;;  %v951_v23 = vpop.f32.mrf.mxu1 }
 0x257   :  { %v1288_v24 = vpop.f32.mrf.mxu1 }
 0x2a6   :  { %v170_v25 = vpop.xlane.xlu0 %169 }
 0x2a7   :  { %v171_v26 = vsub.f32 %v162_v39, %v170_v25  ;;  %v642_v25 = vsel %vm183_vm2, %v637_v1, 0 }
 0x2a9   :  { %v172_v27 = vmul.f32 1.442695, %v171_v26 }
 0x2ab   :  { %1348 = vpow2.f32 %v172_v27 }
 0x2ae   :  { %v279_v28 = vpop.xlane.xlu1 %278 }
 0x2af   :  { %v280_v29 = vsub.f32 %v272_v45, %v279_v28 }
 0x2b1   :  { %v281_v30 = vmul.f32 1.442695, %v280_v29 }
 0x2b3   :  { %1350 = vpow2.f32 %v281_v30 }
 0x2b6   :  { %v390_v31 = vpop.xlane.xlu0 %389 }
 0x2b7   :  { %v391_v32 = vsub.f32 %v383_v51, %v390_v31 }
 0x2b8   :  { %v1349_v33 = vpop.eup %1348 }
 0x2b9   :  { %v392_v34 = vmul.f32 1.442695, %v391_v32  ;;  %v174_v35 = vsel %vm167_vm4, %v1349_v33, 0.0 }
 0x2ba   :  { %175 = vadd.xlane.f32.xlu1 %v174_v35 }
 0x2bb   :  { %1352 = vpow2.f32 %v392_v34 }
 0x2be   :  { %v500_v36 = vpop.xlane.xlu0 %499 }
 0x2bf   :  { %v501_v37 = vsub.f32 %v493_v57, %v500_v36 }
 0x2c0   :  { %v1351_v38 = vpop.eup %1350 }
 0x2c1   :  { %v502_v40 = vmul.f32 1.442695, %v501_v37  ;;  %v283_v39 = vsel %vm167_vm4, %v1351_v38, 0.0 }
 0x2c2   :  { %284 = vadd.xlane.f32.xlu0 %v283_v39 }
 0x2c3   :  { %1354 = vpow2.f32 %v502_v40 }
 0x2c6   :  { %v627_v45 = vpop.xlane.xlu1 %626 }
 0x2c7   :  { %v628_v46 = vsub.f32 %v1562_v0, %v627_v45 }
 0x2c8   :  { %v1571_v41 = vpop.eup %1352 }
 0x2c9   :  { %v394_v42 = vsel %vm167_vm4, %v1571_v41, 0.0  ;;  %v629_v50 = vmul.f32 1.442695, %v628_v46 }
 0x2ca   :  { %395 = vadd.xlane.f32.xlu1 %v394_v42 }
 0x2cb   :  { %1356 = vpow2.f32 %v629_v50 }
 0x2ce   :  { %v736_v47 = vpop.xlane.xlu0 %735 }
 0x2cf   :  { %v737_v49 = vsub.f32 %v729_v7, %v736_v47 }
 0x2d0   :  { %v1575_v43 = vpop.eup %1354 }
 0x2d1   :  { %v504_v44 = vsel %vm167_vm4, %v1575_v43, 0.0  ;;  %v738_v53 = vmul.f32 1.442695, %v737_v49 }
 0x2d2   :  { %505 = vadd.xlane.f32.xlu0 %v504_v44 }
 0x2d3   :  { %1358 = vpow2.f32 %v738_v53 }
 0x2d6   :  { %v846_v48 = vpop.xlane.xlu1 %845 }
 0x2d7   :  { %v847_v51 = vsub.f32 %v839_v14, %v846_v48 }
 0x2d8   :  { %v1586_v57 = vpop.eup %1356 }
 0x2d9   :  { %v848_v54 = vmul.f32 1.442695, %v847_v51  ;;  %v631_v59 = vsel %vm167_vm4, %v1586_v57, 0.0 }
 0x2db   :  { %400 = vrot.lane.b32.xlu1 %v1493_v12, %s1434_s10  ;;  %1360 = vpow2.f32 %v848_v54 }
 0x2de   :  { %v956_v52 = vpop.xlane.xlu0 %955 }
 0x2df   :  { %510 = vrot.lane.b32.xlu1 %v1493_v12, %s1435_s11  ;;  %v957_v55 = vsub.f32 %v949_v20, %v956_v52 }
 0x2e0   :  { %v1588_v58 = vpop.eup %1358 }
 0x2e1   :  { %v958_v56 = vmul.f32 1.442695, %v957_v55  ;;  %v740_v61 = vsel %vm167_vm4, %v1588_v58, 0.0 }
 0x2e3   :  { %1362 = vpow2.f32 %v958_v56 }
 0x2e8   :  { %290 = vrot.lane.b32.xlu0 %v1493_v12, %s1430_s2  ;;  %v1592_v60 = vpop.eup %1360 }
 0x2e9   :  { %v850_v62 = vsel %vm167_vm4, %v1592_v60, 0.0 }
 0x2f0   :  { %v1598_v63 = vpop.eup %1362 }
 0x2f1   :  { %v960_v0 = vsel %vm167_vm4, %v1598_v63, 0.0 }
 0x303   :  { %632 = vadd.xlane.f32.xlu1 %v631_v59 }
 0x307   :  { %741 = vadd.xlane.f32.xlu1 %v740_v61  ;;  %851 = vadd.xlane.f32.xlu0 %v850_v62 }
 0x30b   :  { %961 = vadd.xlane.f32.xlu1 %v960_v0 }
 0x31c   :  { %856 = vrot.lane.b32.xlu1 %v637_v1, %s1434_s10 }
 0x31d   :  { %746 = vrot.lane.b32.xlu0 %v637_v1, %s1430_s2 }
 0x321   :  { %966 = vrot.lane.b32.xlu0 %v637_v1, %s1435_s11  ;;  %v1344_v1 = vld [vmem:[%s1680_s3 + $0x18] sm:$0xff]  }
 0x322   :  { %1296 = vmatpush3.bf16.msra.mxu1 %v1344_v1 }
 0x323   :  { %1297 = vmatprep.subr.bf16.mxu1 %v1428_v6 }
 0x343   :  { %v176_v2 = vpop.xlane.xlu1 %175 }
 0x344   :  { %1364 = vrcp.f32 %v176_v2 }
 0x34b   :  { %v285_v3 = vpop.xlane.xlu0 %284 }
 0x34c   :  { %1366 = vrcp.f32 %v285_v3 }
 0x351   :  { %v1365_v4 = vpop.eup %1364 }
 0x352   :  { %v178_v5 = vmul.f32 %v1365_v4, %v1349_v33 }
 0x353   :  { %v396_v7 = vpop.xlane.xlu1 %395 }
 0x354   :  { %v179_v8 = vpack.c.bf16 %v178_v5, %v178_v5  ;;  %1368 = vrcp.f32 %v396_v7  ;;  %v1345_v5 = vld [vmem:[%s1680_s3 + $0x10] sm:$0xff]  }
 0x355   :  { %1298 = vmatpush3.bf16.msra.mxu1 %v1345_v5 }
 0x356   :  { %1208 = vmatmul.mubr.msk.bf16.vlgmr.msra.gmra.mxu0 %vm167_vm4, %v179_v8  ;;  %1299 = vmatprep.subr.bf16.mxu1 %v1428_v6 }
 0x357   :  { %1219 = vmatprep.mubr.msk.bf16.mxu0 %vm1429_vm1, %v1428_v6  ;;  %v401_v14 = vpop.permute.xlu1 %400 }
 0x358   :  { %v406_v17 = vsel %vm183_vm2, %v401_v14, 0 }
 0x359   :  { %v1367_v12 = vpop.eup %1366 }
 0x35a   :  { %v287_v10 = vmul.f32 %v1367_v12, %v1351_v38  ;;  %v1346_v12 = vld [vmem:[%s1680_s3 + $0x8] sm:$0xff]  }
 0x35b   :  { %v506_v9 = vpop.xlane.xlu0 %505  ;;  %v511_v19 = vpop.permute.xlu1 %510  ;;  %1300 = vmatpush3.bf16.msra.mxu1 %v1346_v12 }
 0x35c   :  { %1370 = vrcp.f32 %v506_v9  ;;  %v288_v15 = vpack.c.bf16 %v287_v10, %v287_v10  ;;  %v516_v22 = vsel %vm183_vm2, %v511_v19, 0  ;;  %1301 = vmatprep.subr.bf16.mxu1 %v1428_v6 }
 0x35f   :  { %v291_v11 = vpop.permute.xlu0 %290 }
 0x360   :  { %v296_v13 = vsel %vm183_vm2, %v291_v11, 0 }
 0x361   :  { %1218 = vmatpush3.bf16.msra.mxu0 %v296_v13  ;;  %v1369_v16 = vpop.eup %1368  ;;  %v1347_v13 = vld [vmem:[%s1680_s3] sm:$0xff]  }
 0x362   :  { %1229 = vmatprep.subr.bf16.mxu0 %v1428_v6  ;;  %v398_v18 = vmul.f32 %v1369_v16, %v1571_v41  ;;  %1302 = vmatpush3.bf16.msra.mxu1 %v1347_v13 }
 0x364   :  { %1220 = vmatmul.mubr.msk.bf16.vlgmr.msra.gmra.mxu0 %vm167_vm4, %v288_v15  ;;  %v399_v20 = vpack.c.bf16 %v398_v18, %v398_v18 }
 0x365   :  { %1230 = vmatpush3.bf16.msra.mxu0 %v406_v17  ;;  %1231 = vmatprep.mubr.msk.bf16.mxu0 %vm1429_vm1, %v1428_v6 }
 0x366   :  { %1241 = vmatprep.subr.bf16.mxu0 %v1428_v6 }
 0x369   :  { %v1371_v21 = vpop.eup %1370 }
 0x36a   :  { %v508_v23 = vmul.f32 %v1371_v21, %v1575_v43 }
 0x36c   :  { %1232 = vmatmul.mubr.msk.bf16.vlgmr.msra.gmra.mxu0 %vm167_vm4, %v399_v20  ;;  %v509_v24 = vpack.c.bf16 %v508_v23, %v508_v23 }
 0x36d   :  { %1242 = vmatpush3.bf16.msra.mxu0 %v516_v22  ;;  %1243 = vmatprep.mubr.msk.bf16.mxu0 %vm1429_vm1, %v1428_v6 }
 0x36e   :  { %1253 = vmatprep.subr.bf16.mxu0 %v1428_v6 }
 0x374   :  { %1244 = vmatmul.mubr.msk.bf16.vlgmr.msra.gmra.mxu0 %vm167_vm4, %v509_v24 }
 0x375   :  { %1254 = vmatpush3.bf16.msra.mxu0 %v642_v25  ;;  %1255 = vmatprep.mubr.msk.bf16.mxu0 %vm1429_vm1, %v1428_v6 }
 0x376   :  { %1265 = vmatprep.subr.bf16.mxu0 %v1428_v6 }
 0x38c   :  { %v633_v26 = vpop.xlane.xlu1 %632 }
 0x38d   :  { %1372 = vrcp.f32 %v633_v26 }
 0x390   :  { %v742_v27 = vpop.xlane.xlu1 %741  ;;  %v852_v28 = vpop.xlane.xlu0 %851 }
 0x391   :  { %1374 = vrcp.f32 %v742_v27 }
 0x392   :  { %1376 = vrcp.f32 %v852_v28 }
 0x394   :  { %v747_v31 = vpop.permute.xlu0 %746  ;;  %v962_v34 = vpop.xlane.xlu1 %961 }
 0x395   :  { %v752_v35 = vsel %vm183_vm2, %v747_v31, 0  ;;  %1378 = vrcp.f32 %v962_v34 }
 0x398   :  { %v857_v37 = vpop.permute.xlu1 %856  ;;  %v967_v42 = vpop.permute.xlu0 %966 }
 0x399   :  { %v862_v39 = vsel %vm183_vm2, %v857_v37, 0  ;;  %v972_v45 = vsel %vm183_vm2, %v967_v42, 0 }
 0x39a   :  { %v1373_v29 = vpop.eup %1372 }
 0x39b   :  { %v635_v30 = vmul.f32 %v1373_v29, %v1586_v57 }
 0x39d   :  { %v636_v32 = vpack.c.bf16 %v635_v30, %v635_v30 }
 0x39e   :  { %v1375_v33 = vpop.eup %1374 }
 0x39f   :  { %1256 = vmatmul.mubr.msk.bf16.vlgmr.msra.gmra.mxu0 %vm167_vm4, %v636_v32  ;;  %v744_v36 = vmul.f32 %v1375_v33, %v1588_v58  ;;  %v1377_v40 = vpop.eup %1376 }
 0x3a0   :  { %1266 = vmatpush3.bf16.msra.mxu0 %v752_v35  ;;  %1267 = vmatprep.mubr.msk.bf16.mxu0 %vm1429_vm1, %v1428_v6  ;;  %v854_v41 = vmul.f32 %v1377_v40, %v1592_v60  ;;  %v1156_v40 = vld [vmem:[%s1681_s4] ss:$0 sm:$0xff] }
 0x3a1   :  { %1277 = vmatprep.subr.bf16.mxu0 %v1428_v6  ;;  %v745_v38 = vpack.c.bf16 %v744_v36, %v744_v36 }
 0x3a2   :  { %v855_v43 = vpack.c.bf16 %v854_v41, %v854_v41  ;;  %v1379_v44 = vpop.eup %1378 }
 0x3a3   :  { %v964_v46 = vmul.f32 %v1379_v44, %v1598_v63 }
 0x3a5   :  { %v965_v47 = vpack.c.bf16 %v964_v46, %v964_v46 }
 0x3a7   :  { %1268 = vmatmul.mubr.msk.bf16.vlgmr.msra.gmra.mxu0 %vm167_vm4, %v745_v38 }
 0x3a8   :  { %1278 = vmatpush3.bf16.msra.mxu0 %v862_v39  ;;  %1279 = vmatprep.mubr.msk.bf16.mxu0 %vm1429_vm1, %v1428_v6 }
 0x3a9   :  { %1289 = vmatprep.subr.bf16.mxu0 %v1428_v6 }
 0x3af   :  { %1280 = vmatmul.mubr.msk.bf16.vlgmr.msra.gmra.mxu0 %vm167_vm4, %v855_v43 }
 0x3b0   :  { %1290 = vmatpush3.bf16.msra.mxu0 %v972_v45  ;;  %1291 = vmatprep.mubr.msk.bf16.mxu0 %vm1429_vm1, %v1428_v6 }
 0x3b7   :  { %1292 = vmatmul.mubr.msk.bf16.vlgmr.msra.gmra.mxu0 %vm167_vm4, %v965_v47 }
 0x416   :  { %v221_v48 = vpop.f32.mrf.mxu0 }
 0x418   :  { %v1209_v49 = vpop.f32.mrf.mxu0 }
 0x41a   :  { %v224_v50 = vpop.f32.mrf.mxu0 }
 0x41c   :  { %v1210_v51 = vpop.f32.mrf.mxu0 }
 0x424   :  { %v332_v52 = vpop.f32.mrf.mxu0 }
 0x426   :  { %v1221_v53 = vpop.f32.mrf.mxu0 }
 0x428   :  { %v335_v54 = vpop.f32.mrf.mxu0 }
 0x42a   :  { %v1222_v55 = vpop.f32.mrf.mxu0 }
 0x42c   :  { %v442_v56 = vpop.f32.mrf.mxu0 }
 0x42e   :  { %v1233_v57 = vpop.f32.mrf.mxu0 }
 0x430   :  { %v445_v58 = vpop.f32.mrf.mxu0 }
 0x432   :  { %v1234_v59 = vpop.f32.mrf.mxu0 }
 0x434   :  { %v552_v60 = vpop.f32.mrf.mxu0 }
 0x436   :  { %v1245_v61 = vpop.f32.mrf.mxu0 }
 0x438   :  { %v555_v62 = vpop.f32.mrf.mxu0 }
 0x43a   :  { %v1246_v0 = vpop.f32.mrf.mxu0 }
 0x45f   :  { %v678_v63 = vpop.f32.mrf.mxu0 }
 0x461   :  { %v1257_v2 = vpop.f32.mrf.mxu0 }
 0x463   :  { %v681_v3 = vpop.f32.mrf.mxu0 }
 0x465   :  { %v1258_v4 = vpop.f32.mrf.mxu0 }
 0x467   :  { %v788_v7 = vpop.f32.mrf.mxu0 }
 0x468   :  { %v1322_v8 = vpack.i.bf16 %v788_v7, %v332_v52 }
 0x469   :  { %v1269_v9 = vpop.f32.mrf.mxu0 }
 0x46a   :  { %1323 = vrot.lane.b32.xlu0 %v1322_v8, %s1433_s9 }
 0x46b   :  { %v791_v10 = vpop.f32.mrf.mxu0 }
 0x46d   :  { %v1270_v11 = vpop.f32.mrf.mxu0 }
 0x46f   :  { %v898_v14 = vpop.f32.mrf.mxu0 }
 0x470   :  { %v1327_v15 = vpack.i.bf16 %v898_v14, %v442_v56 }
 0x471   :  { %v1281_v16 = vpop.f32.mrf.mxu0 }
 0x472   :  { %1328 = vrot.lane.b32.xlu1 %v1327_v15, %s1431_s7 }
 0x473   :  { %v901_v17 = vpop.f32.mrf.mxu0 }
 0x475   :  { %v1282_v18 = vpop.f32.mrf.mxu0 }
 0x477   :  { %v1008_v19 = vpop.f32.mrf.mxu0 }
 0x478   :  { %v1332_v20 = vpack.i.bf16 %v1008_v19, %v552_v60 }
 0x479   :  { %v1293_v21 = vpop.f32.mrf.mxu0 }
 0x47a   :  { %1333 = vrot.lane.b32.xlu0 %v1332_v20, %s1432_s8 }
 0x47b   :  { %v1011_v22 = vpop.f32.mrf.mxu0 }
 0x47d   :  { %v1294_v23 = vpop.f32.mrf.mxu0 }
 0x4dc   :  { %v1324_v6 = vpop.permute.xlu0 %1323 }
 0x4dd   :  { %v1326_v25 = vunpack.i.h.bf16 %v1324_v6  ;;  %v1325_v26 = vunpack.i.l.bf16 %v1324_v6 }
 0x4df   :  { %v1026_v30 = vsel %vm120_vm3, %v678_v63, %v1326_v25  ;;  %v570_v31 = vsel %vm120_vm3, %v221_v48, %v1325_v26 }
 0x4e4   :  { %v1329_v24 = vpop.permute.xlu1 %1328 }
 0x4e5   :  { %v1331_v27 = vunpack.i.h.bf16 %v1329_v24  ;;  %v1330_v28 = vunpack.i.l.bf16 %v1329_v24 }
 0x4e7   :  { %v1027_v34 = vsel %vm67_vm0, %v1026_v30, %v1331_v27  ;;  %v571_v35 = vsel %vm67_vm0, %v570_v31, %v1330_v28 }
 0x4ec   :  { %v1334_v29 = vpop.permute.xlu0 %1333 }
 0x4ed   :  { %v1336_v32 = vunpack.i.h.bf16 %v1334_v29  ;;  %v1335_v33 = vunpack.i.l.bf16 %v1334_v29 }
 0x4ef   :  { %v1028_v36 = vsel %vm572_vm5, %v1027_v34, %v1336_v32  ;;  %v573_v37 = vsel %vm572_vm5, %v571_v35, %v1335_v33 }
 0x4f0   :  { %v1029_v38 = vpack.c.bf16 %v1028_v36, %v573_v37 }
 0x4f2   :  { %1304 = vmatmul.mubr.msk.bf16.vlgmr.msra.gmra.mxu1 %vm1069_vm6, %v1029_v38 }
 0x5b2   :  { %v1107_v39 = vpop.f32.mrf.mxu1 }
 0x5b3   :  { %v1108_v41 = vadd.f32 %v1156_v40, %v1107_v39 }
 0x5b4   :  { %v1305_v42 = vpop.f32.mrf.mxu1 }
 0x5b5   :  { %1114 = vst.msk [vmem:[#allocation5] sm:$0xff] %vm67_vm0, %v1108_v41 }
 0x5b6   :  { %v1110_v43 = vpop.f32.mrf.mxu1 }
 0x5b7   :  { %v1111_v44 = vadd.f32 %v1156_v40, %v1110_v43 }
 0x5b8   :  { %v1306_v45 = vpop.f32.mrf.mxu1 }
 0x5b9   :  { %1115 = vst.msk [vmem:[#allocation5 + $0x8] sm:$0xff] %vm67_vm0, %v1111_v44 }
 0x5ba   :  { %1411 = shalt.err (!%p1408_p9)
}
 0x5bb   :  { %s1437_s4 = smov 128   ;;  %s1438_s27 = smov 8  }
 0x5bc   :  { %1127 = dma.vmem_to_hbm [thread:$0]  %s1122_s25, 256, %s1682_s5, [#allocation4], %s1437_s4, %s1437_s4, %s1438_s27  }
 0x5bd   :  { %1422 = dma.done.wait [#allocation4], 256  }
 0x5be   :  { %1423 = vsyncadd [#allocation4], 4294967040 }
 0x5bf   :  { %1131 = vsyncpa [#allocation3], 1 }
 0x5c0   :  { %1132 = vsyncpa [#allocation4], 1 }

</bundles_post_ra>
